<compile_context>
chip_gen: v5e
topology: v5e:2x2
jax: 0.10.0
libtpu: 0.0.40
codegen_flags: <defaults>
</compile_context>

<pallas_src>
import functools
import math

import jax
import jax.numpy as jnp
from jax.experimental import pallas as pl
from jax.experimental.pallas import tpu as pltpu

HIDDEN = 256
DEFAULT_TILE_B = 1024  # multiple of 8; a few MiB working set at most


def _round_up(x, m):
    return ((x + m - 1) // m) * m


def critic_kernel(x_ref,
                  wa_ref, ba_ref,
                  w11_ref, b11_ref,
                  w22_ref, b22_ref,
                  wq1_ref, wq2_ref, bq_ref,
                  q_ref):
    # ---- Layer 1: one fused (sd+ad, 512) bf16 matmul for both branches. ----
    h = (jnp.dot(x_ref[...], wa_ref[...], preferred_element_type=jnp.float32)
         + ba_ref[...])
    h = jnp.maximum(h, 0.0).astype(jnp.bfloat16)          # (tb, 512)

    # ---- Layer 2: un-fused per-branch (256, 256) matmuls. ------------------
    # Lane-256 split point is on a 128-lane boundary -> layout-clean slices.
    h1 = (jnp.dot(h[:, :HIDDEN], w11_ref[...],
                  preferred_element_type=jnp.float32) + b11_ref[...])
    h1 = jnp.maximum(h1, 0.0)                              # (tb, 256) f32
    h2 = (jnp.dot(h[:, HIDDEN:], w22_ref[...],
                  preferred_element_type=jnp.float32) + b22_ref[...])
    h2 = jnp.maximum(h2, 0.0)                              # (tb, 256) f32

    # ---- Output heads on VPU/XLU (N=2 would waste MXU output lanes). -------
    q1 = jnp.sum(h1 * wq1_ref[...], axis=-1, keepdims=True)   # (tb, 1)
    q2 = jnp.sum(h2 * wq2_ref[...], axis=-1, keepdims=True)   # (tb, 1)
    lane = jax.lax.broadcasted_iota(jnp.int32, (q1.shape[0], 2), 1)
    q_ref[...] = jnp.where(lane == 0, q1, q2) + bq_ref[...]   # (tb, 2)


def pack_params(params, *, state_dim, state_norm_enable=True,
                norm_mean=None, norm_var=None, eps=1e-8):
    """One-time weight packing + eval-mode normalization fold (all in f32,
    then cast the matmul weights to bf16)."""
    wa = jnp.concatenate([params["w1"], params["w2"]], axis=1)    # (in, 512)
    ba = jnp.concatenate([params["b1"], params["b2"]], axis=1)    # (1, 512)

    if state_norm_enable:
        inv_s = 1.0 / jnp.sqrt(norm_var.astype(jnp.float32) + eps)   # (sd,)
        ws = wa[:state_dim]
        # ((x - mean) * inv_s) @ Ws == x @ (inv_s*Ws) - (mean*inv_s) @ Ws
        ba = ba - (norm_mean.astype(jnp.float32) * inv_s)[None, :] @ ws
        wa = wa.at[:state_dim].set(ws * inv_s[:, None])

    return dict(
        wa=wa.astype(jnp.bfloat16),                 # (in, 512) bf16
        ba=ba.astype(jnp.float32),                  # (1, 512)  f32
        w11=params["w11"].astype(jnp.bfloat16),     # (256, 256) bf16
        b11=params["b11"].astype(jnp.float32),      # (1, 256)  f32
        w22=params["w22"].astype(jnp.bfloat16),     # (256, 256) bf16
        b22=params["b22"].astype(jnp.float32),      # (1, 256)  f32
        wq1=params["wq1"].T.astype(jnp.float32),    # (1, 256)  f32
        wq2=params["wq2"].T.astype(jnp.float32),    # (1, 256)  f32
        bq=jnp.concatenate([params["bq1"], params["bq2"]], axis=1),  # (1, 2)
    )


@functools.partial(jax.jit, static_argnames=("tile_b",))
def critic_forward(state, action, packed, *, tile_b=DEFAULT_TILE_B):
    B = state.shape[0]
    # Wrapper-side concat replaces torch.cat; normalization already folded.
    x = jnp.concatenate([state.astype(jnp.float32),
                         action.astype(jnp.float32)], axis=-1)
    x = x.astype(jnp.bfloat16)
    K = x.shape[1]
    H = HIDDEN

    # Batch tile: multiple of 8; >= 2 grid steps when B > 8 so v7x's second
    # TensorCore gets work; capped at tile_b for v6e/v5e single-core.
    tb = min(tile_b, max(8, _round_up(pl.cdiv(B, 2), 8)))
    Bp = _round_up(B, tb)
    if Bp != B:
        x = jnp.pad(x, ((0, Bp - B), (0, 0)))

    act_spec = pl.BlockSpec((tb, K), lambda i: (i, 0))
    res_spec = lambda r, c: pl.BlockSpec((r, c), lambda i: (0, 0))  # resident

    q = pl.pallas_call(
        critic_kernel,
        out_shape=jax.ShapeDtypeStruct((Bp, 2), jnp.float32),
        grid=(Bp // tb,),
        in_specs=[
            act_spec,
            res_spec(K, 2 * H), res_spec(1, 2 * H),
            res_spec(H, H), res_spec(1, H),
            res_spec(H, H), res_spec(1, H),
            res_spec(1, H), res_spec(1, H), res_spec(1, 2),
        ],
        out_specs=pl.BlockSpec((tb, 2), lambda i: (i, 0)),
        compiler_params=pltpu.CompilerParams(
            dimension_semantics=("parallel",)),
    )(x,
      packed["wa"], packed["ba"],
      packed["w11"], packed["b11"],
      packed["w22"], packed["b22"],
      packed["wq1"], packed["wq2"], packed["bq"])

    q = q[:B]
    return q[:, 0:1], q[:, 1:2]


def init_params(key, state_dim, action_dim):
    # Mirrors Critic._initialize_weights(): orthogonal_(weight, gain=sqrt(2))
    # for every layer (the PyTorch `name != 'q1' or name != 'q2'` condition is
    # always True), biases = 0.
    gain = math.sqrt(2.0)
    ortho = jax.nn.initializers.orthogonal(scale=gain)
    in_dim = state_dim + action_dim
    ks = jax.random.split(key, 6)

    def linear(k, fan_in, fan_out):
        # PyTorch Linear weight is (out, in); we store (in, out).
        w = ortho(k, (fan_out, fan_in), jnp.float32).T
        b = jnp.zeros((1, fan_out), jnp.float32)
        return w, b

    w1, b1 = linear(ks[0], in_dim, HIDDEN)
    w11, b11 = linear(ks[1], HIDDEN, HIDDEN)
    wq1, bq1 = linear(ks[2], HIDDEN, 1)
    w2, b2 = linear(ks[3], in_dim, HIDDEN)
    w22, b22 = linear(ks[4], HIDDEN, HIDDEN)
    wq2, bq2 = linear(ks[5], HIDDEN, 1)
    return dict(w1=w1, b1=b1, w11=w11, b11=b11, wq1=wq1, bq1=bq1,
                w2=w2, b2=b2, w22=w22, b22=b22, wq2=wq2, bq2=bq2)


def _reference(state, action, params, norm_mean, norm_var, eps=1e-8):
    # f32 reference matching the PyTorch forward (eval-mode RunningMeanStd).
    x = (state - norm_mean) / jnp.sqrt(norm_var + eps)
    sq = jnp.concatenate([x, action], axis=-1)
    h1 = jnp.maximum(sq @ params["w1"] + params["b1"], 0.0)
    h1 = jnp.maximum(h1 @ params["w11"] + params["b11"], 0.0)
    q1 = h1 @ params["wq1"] + params["bq1"]
    h2 = jnp.maximum(sq @ params["w2"] + params["b2"], 0.0)
    h2 = jnp.maximum(h2 @ params["w22"] + params["b22"], 0.0)
    q2 = h2 @ params["wq2"] + params["bq2"]
    return q1, q2


if __name__ == "__main__":
    key = jax.random.PRNGKey(0)
    kp, kst, kac, km, kv = jax.random.split(key, 5)

    B, state_dim, action_dim = 8, 12, 4
    params = init_params(kp, state_dim, action_dim)
    state = jax.random.normal(kst, (B, state_dim), dtype=jnp.float32)
    action = jax.random.normal(kac, (B, action_dim), dtype=jnp.float32)

    # Non-trivial RunningMeanStd stats (eval mode -> no running update) so the
    # normalization fold is actually exercised.
    # TODO(synk): training-mode running-stat update is stateful and stays
    # outside the kernel; re-run pack_params after any stats update.
    norm_mean = jax.random.normal(km, (state_dim,), dtype=jnp.float32)
    norm_var = jax.random.uniform(kv, (state_dim,), dtype=jnp.float32,
                                  minval=0.5, maxval=2.0)

    packed = pack_params(params, state_dim=state_dim, state_norm_enable=True,
                         norm_mean=norm_mean, norm_var=norm_var)

    q1, q2 = critic_forward(state, action, packed)
    jax.block_until_ready((q1, q2))

    r1, r2 = _reference(state, action, params, norm_mean, norm_var)
    assert q1.shape == (B, 1) and q2.shape == (B, 1)
    # bf16 matmuls with f32 accumulation -> relaxed tolerance vs f32 reference.
    assert jnp.allclose(q1, r1, atol=5e-2, rtol=5e-2), (q1, r1)
    assert jnp.allclose(q2, r2, atol=5e-2, rtol=5e-2), (q2, r2)

    print("KERNEL_OK")
</pallas_src>

<mosaic_0001>
module attributes {stable_mosaic.version = 11 : i64} {
  func.func @critic_kernel(%arg0: i32, %arg1: memref<8x16xbf16, #tpu.memory_space<vmem>>, %arg2: memref<16x512xbf16, #tpu.memory_space<vmem>>, %arg3: memref<1x512xf32, #tpu.memory_space<vmem>>, %arg4: memref<256x256xbf16, #tpu.memory_space<vmem>>, %arg5: memref<1x256xf32, #tpu.memory_space<vmem>>, %arg6: memref<256x256xbf16, #tpu.memory_space<vmem>>, %arg7: memref<1x256xf32, #tpu.memory_space<vmem>>, %arg8: memref<1x256xf32, #tpu.memory_space<vmem>>, %arg9: memref<1x256xf32, #tpu.memory_space<vmem>>, %arg10: memref<1x2xf32, #tpu.memory_space<vmem>>, %arg11: memref<8x2xf32, #tpu.memory_space<vmem>>) attributes {dimension_semantics = [#tpu.dimension_semantics<parallel>], iteration_bounds = array<i64: 1>, scalar_prefetch = 0 : i64, scratch_operands = 0 : i64, tpu.core_type = #tpu.core_type<tc>, window_params = [{transform_indices = @transform_0, window_bounds = array<i64: 8, 16>}, {pipeline_mode = #tpu.pipeline_mode<synchronous>, transform_indices = @transform_1, window_bounds = array<i64: 16, 512>}, {pipeline_mode = #tpu.pipeline_mode<synchronous>, transform_indices = @transform_2, window_bounds = array<i64: 1, 512>}, {pipeline_mode = #tpu.pipeline_mode<synchronous>, transform_indices = @transform_3, window_bounds = array<i64: 256, 256>}, {pipeline_mode = #tpu.pipeline_mode<synchronous>, transform_indices = @transform_4, window_bounds = array<i64: 1, 256>}, {pipeline_mode = #tpu.pipeline_mode<synchronous>, transform_indices = @transform_5, window_bounds = array<i64: 256, 256>}, {pipeline_mode = #tpu.pipeline_mode<synchronous>, transform_indices = @transform_6, window_bounds = array<i64: 1, 256>}, {pipeline_mode = #tpu.pipeline_mode<synchronous>, transform_indices = @transform_7, window_bounds = array<i64: 1, 256>}, {pipeline_mode = #tpu.pipeline_mode<synchronous>, transform_indices = @transform_8, window_bounds = array<i64: 1, 256>}, {pipeline_mode = #tpu.pipeline_mode<synchronous>, transform_indices = @transform_9, window_bounds = array<i64: 1, 2>}, {transform_indices = @transform_10, window_bounds = array<i64: 8, 2>}]} {
    %c0 = arith.constant 0 : index
    %c0_0 = arith.constant 0 : index
    %0 = vector.load %arg1[%c0, %c0_0] : memref<8x16xbf16, #tpu.memory_space<vmem>>, vector<8x16xbf16>
    %c0_1 = arith.constant 0 : index
    %c0_2 = arith.constant 0 : index
    %1 = vector.load %arg2[%c0_1, %c0_2] : memref<16x512xbf16, #tpu.memory_space<vmem>>, vector<16x512xbf16>
    %cst = arith.constant dense<0.000000e+00> : vector<8x512xf32>
    %2 = tpu.matmul %0, %1, %cst {dimension_numbers = #tpu.dot_dimension_numbers<[1], [0], [0], [1], [0, 0, 1, 1], [], []>} : vector<8x16xbf16>, vector<16x512xbf16>, vector<8x512xf32> -> vector<8x512xf32>
    %c0_3 = arith.constant 0 : index
    %c0_4 = arith.constant 0 : index
    %3 = vector.load %arg3[%c0_3, %c0_4] : memref<1x512xf32, #tpu.memory_space<vmem>>, vector<1x512xf32>
    %4 = vector.broadcast %3 : vector<1x512xf32> to vector<8x512xf32>
    %5 = arith.addf %2, %4 : vector<8x512xf32>
    %cst_5 = arith.constant 0.000000e+00 : f32
    %6 = vector.broadcast %cst_5 : f32 to vector<8x512xf32>
    %7 = arith.maximumf %5, %6 : vector<8x512xf32>
    %8 = arith.truncf %7 : vector<8x512xf32> to vector<8x512xbf16>
    %9 = vector.extract_strided_slice %8 {offsets = [0, 0], sizes = [8, 256], strides = [1, 1]} : vector<8x512xbf16> to vector<8x256xbf16>
    %c0_6 = arith.constant 0 : index
    %c0_7 = arith.constant 0 : index
    %10 = vector.load %arg4[%c0_6, %c0_7] : memref<256x256xbf16, #tpu.memory_space<vmem>>, vector<256x256xbf16>
    %cst_8 = arith.constant dense<0.000000e+00> : vector<8x256xf32>
    %11 = tpu.matmul %9, %10, %cst_8 {dimension_numbers = #tpu.dot_dimension_numbers<[1], [0], [0], [1], [0, 0, 1, 1], [], []>} : vector<8x256xbf16>, vector<256x256xbf16>, vector<8x256xf32> -> vector<8x256xf32>
    %c0_9 = arith.constant 0 : index
    %c0_10 = arith.constant 0 : index
    %12 = vector.load %arg5[%c0_9, %c0_10] : memref<1x256xf32, #tpu.memory_space<vmem>>, vector<1x256xf32>
    %13 = vector.broadcast %12 : vector<1x256xf32> to vector<8x256xf32>
    %14 = arith.addf %11, %13 : vector<8x256xf32>
    %cst_11 = arith.constant 0.000000e+00 : f32
    %15 = vector.broadcast %cst_11 : f32 to vector<8x256xf32>
    %16 = arith.maximumf %14, %15 : vector<8x256xf32>
    %17 = vector.extract_strided_slice %8 {offsets = [0, 256], sizes = [8, 256], strides = [1, 1]} : vector<8x512xbf16> to vector<8x256xbf16>
    %c0_12 = arith.constant 0 : index
    %c0_13 = arith.constant 0 : index
    %18 = vector.load %arg6[%c0_12, %c0_13] : memref<256x256xbf16, #tpu.memory_space<vmem>>, vector<256x256xbf16>
    %cst_14 = arith.constant dense<0.000000e+00> : vector<8x256xf32>
    %19 = tpu.matmul %17, %18, %cst_14 {dimension_numbers = #tpu.dot_dimension_numbers<[1], [0], [0], [1], [0, 0, 1, 1], [], []>} : vector<8x256xbf16>, vector<256x256xbf16>, vector<8x256xf32> -> vector<8x256xf32>
    %c0_15 = arith.constant 0 : index
    %c0_16 = arith.constant 0 : index
    %20 = vector.load %arg7[%c0_15, %c0_16] : memref<1x256xf32, #tpu.memory_space<vmem>>, vector<1x256xf32>
    %21 = vector.broadcast %20 : vector<1x256xf32> to vector<8x256xf32>
    %22 = arith.addf %19, %21 : vector<8x256xf32>
    %cst_17 = arith.constant 0.000000e+00 : f32
    %23 = vector.broadcast %cst_17 : f32 to vector<8x256xf32>
    %24 = arith.maximumf %22, %23 : vector<8x256xf32>
    %c0_18 = arith.constant 0 : index
    %c0_19 = arith.constant 0 : index
    %25 = vector.load %arg8[%c0_18, %c0_19] : memref<1x256xf32, #tpu.memory_space<vmem>>, vector<1x256xf32>
    %26 = vector.broadcast %25 : vector<1x256xf32> to vector<8x256xf32>
    %27 = arith.mulf %16, %26 : vector<8x256xf32>
    %cst_20 = arith.constant dense<0.000000e+00> : vector<8xf32>
    %28 = vector.multi_reduction <add>, %27, %cst_20 [1] : vector<8x256xf32> to vector<8xf32>
    %29 = vector.shape_cast %28 : vector<8xf32> to vector<8x1xf32>
    %c0_21 = arith.constant 0 : index
    %c0_22 = arith.constant 0 : index
    %30 = vector.load %arg9[%c0_21, %c0_22] : memref<1x256xf32, #tpu.memory_space<vmem>>, vector<1x256xf32>
    %31 = vector.broadcast %30 : vector<1x256xf32> to vector<8x256xf32>
    %32 = arith.mulf %24, %31 : vector<8x256xf32>
    %cst_23 = arith.constant dense<0.000000e+00> : vector<8xf32>
    %33 = vector.multi_reduction <add>, %32, %cst_23 [1] : vector<8x256xf32> to vector<8xf32>
    %34 = vector.shape_cast %33 : vector<8xf32> to vector<8x1xf32>
    %35 = tpu.iota {dimensions = array<i32: 1>} : vector<8x2xi32>
    %c0_i32 = arith.constant 0 : i32
    %36 = vector.broadcast %c0_i32 : i32 to vector<8x2xi32>
    %37 = arith.cmpi eq, %35, %36 : vector<8x2xi32>
    %38 = vector.shape_cast %29 : vector<8x1xf32> to vector<8x1xf32>
    %39 = vector.broadcast %38 : vector<8x1xf32> to vector<8x2xf32>
    %40 = vector.shape_cast %34 : vector<8x1xf32> to vector<8x1xf32>
    %41 = vector.broadcast %40 : vector<8x1xf32> to vector<8x2xf32>
    %42 = arith.select %37, %39, %41 : vector<8x2xi1>, vector<8x2xf32>
    %c0_24 = arith.constant 0 : index
    %c0_25 = arith.constant 0 : index
    %43 = vector.load %arg10[%c0_24, %c0_25] : memref<1x2xf32, #tpu.memory_space<vmem>>, vector<1x2xf32>
    %44 = vector.broadcast %43 : vector<1x2xf32> to vector<8x2xf32>
    %45 = arith.addf %42, %44 : vector<8x2xf32>
    %c0_26 = arith.constant 0 : index
    %c0_27 = arith.constant 0 : index
    %46 = vector.load %arg11[%c0_26, %c0_27] : memref<8x2xf32, #tpu.memory_space<vmem>>, vector<8x2xf32>
    tpu.vector_store %arg11[%c0_26, %c0_27], %45 {strides = array<i32>} : memref<8x2xf32, #tpu.memory_space<vmem>>, vector<8x2xf32>,
    return
  }
  func.func @transform_0(%arg0: i32) -> (i32, i32) {
    %c0_i32 = arith.constant 0 : i32
    %c0_i32_0 = arith.constant 0 : i32
    return %arg0, %c0_i32 : i32, i32
  }
  func.func @transform_1(%arg0: i32) -> (i32, i32) {
    %c0_i32 = arith.constant 0 : i32
    %c0_i32_0 = arith.constant 0 : i32
    %c0_i32_1 = arith.constant 0 : i32
    return %c0_i32, %c0_i32_0 : i32, i32
  }
  func.func @transform_2(%arg0: i32) -> (i32, i32) {
    %c0_i32 = arith.constant 0 : i32
    %c0_i32_0 = arith.constant 0 : i32
    %c0_i32_1 = arith.constant 0 : i32
    return %c0_i32, %c0_i32_0 : i32, i32
  }
  func.func @transform_3(%arg0: i32) -> (i32, i32) {
    %c0_i32 = arith.constant 0 : i32
    %c0_i32_0 = arith.constant 0 : i32
    %c0_i32_1 = arith.constant 0 : i32
    return %c0_i32, %c0_i32_0 : i32, i32
  }
  func.func @transform_4(%arg0: i32) -> (i32, i32) {
    %c0_i32 = arith.constant 0 : i32
    %c0_i32_0 = arith.constant 0 : i32
    %c0_i32_1 = arith.constant 0 : i32
    return %c0_i32, %c0_i32_0 : i32, i32
  }
  func.func @transform_5(%arg0: i32) -> (i32, i32) {
    %c0_i32 = arith.constant 0 : i32
    %c0_i32_0 = arith.constant 0 : i32
    %c0_i32_1 = arith.constant 0 : i32
    return %c0_i32, %c0_i32_0 : i32, i32
  }
  func.func @transform_6(%arg0: i32) -> (i32, i32) {
    %c0_i32 = arith.constant 0 : i32
    %c0_i32_0 = arith.constant 0 : i32
    %c0_i32_1 = arith.constant 0 : i32
    return %c0_i32, %c0_i32_0 : i32, i32
  }
  func.func @transform_7(%arg0: i32) -> (i32, i32) {
    %c0_i32 = arith.constant 0 : i32
    %c0_i32_0 = arith.constant 0 : i32
    %c0_i32_1 = arith.constant 0 : i32
    return %c0_i32, %c0_i32_0 : i32, i32
  }
  func.func @transform_8(%arg0: i32) -> (i32, i32) {
    %c0_i32 = arith.constant 0 : i32
    %c0_i32_0 = arith.constant 0 : i32
    %c0_i32_1 = arith.constant 0 : i32
    return %c0_i32, %c0_i32_0 : i32, i32
  }
  func.func @transform_9(%arg0: i32) -> (i32, i32) {
    %c0_i32 = arith.constant 0 : i32
    %c0_i32_0 = arith.constant 0 : i32
    %c0_i32_1 = arith.constant 0 : i32
    return %c0_i32, %c0_i32_0 : i32, i32
  }
  func.func @transform_10(%arg0: i32) -> (i32, i32) {
    %c0_i32 = arith.constant 0 : i32
    %c0_i32_0 = arith.constant 0 : i32
    return %arg0, %c0_i32 : i32, i32
  }
}

</mosaic_0001>

<bundles_post_ra>
// kernel: critic_forward.1
= control target key start
LH: loop header
LB: loop body
LE: loop exit
PB: predicated region body
PF: predicated region fallthrough
CT: control target
= control target key end

     0   :  { %15 = vsyncpa [#allocation3], 0  ;;  %s1264_s0 = inlined_call_operand.vmem [shape: bf16[8,16], index: 0, kind: input, shape index: {}]   ;;  %s1265_s1 = inlined_call_operand.hbm [shape: bf16[16,512], index: 1, kind: input, shape index: {}]   ;;  %s1266_s2 = inlined_call_operand.vmem [shape: f32[1,512], index: 2, kind: input, shape index: {}]   ;;  %s1267_s3 = inlined_call_operand.hbm [shape: bf16[256,256], index: 3, kind: input, shape index: {}]   ;;  %s1268_s4 = inlined_call_operand.vmem [shape: f32[1,256], index: 4, kind: input, shape index: {}]   ;;  %s1269_s5 = inlined_call_operand.hbm [shape: bf16[256,256], index: 5, kind: input, shape index: {}]   ;;  %s1270_s6 = inlined_call_operand.vmem [shape: f32[1,256], index: 6, kind: input, shape index: {}]   ;;  %s1271_s7 = inlined_call_operand.vmem [shape: f32[1,256], index: 7, kind: input, shape index: {}]   ;;  %s1272_s8 = inlined_call_operand.vmem [shape: f32[1,256], index: 8, kind: input, shape index: {}]   ;;  %s1273_s9 = inlined_call_operand.vmem [shape: f32[1,2], index: 9, kind: input, shape index: {}]   ;;  %s1274_s10 = inlined_call_operand.vmem [shape: f32[8,2], index: 10, kind: output, shape index: {}]  }
   0x1   :  { %16 = vsyncpa [#allocation5], 0  ;;  %s38_s15 = sshll.u32 %s1267_s3, 4  ;;  %s1165_s16 = smov [#allocation4]   ;;  %s39_s15 = int_to_ptr.hbm [resolvable:$true] %s38_s15 }
   0x2   :  { %s40_s17 = sshll.u32 %s1165_s16, 4  ;;  %s23_s20 = sshll.u32 %s1265_s1, 4  ;;  %s41_s17 = int_to_ptr.vmem [resolvable:$true] %s40_s17  ;;  %s24_s20 = int_to_ptr.hbm [resolvable:$true] %s23_s20 }
   0x3   :  { %s1166_s21 = smov 128   ;;  %s1167_s22 = smov 8  }
   0x4   :  { %46 = dma.hbm_to_vmem [thread:$0]  %s39_s15, 4096, %s41_s17, [#allocation5], %s1166_s21, %s1166_s21, %s1167_s22  }
   0x5   :  { %s1168_s23 = smov [#allocation2]   ;;  %s1169_s25 = smov 256  }
   0x6   :  { %s25_s24 = sshll.u32 %s1168_s23, 4  ;;  %s1170_s26 = smov 16   ;;  %s26_s24 = int_to_ptr.vmem [resolvable:$true] %s25_s24 }
   0x7   :  { %31 = dma.hbm_to_vmem [thread:$0]  %s24_s20, 512, %s26_s24, [#allocation3], %s1169_s25, %s1169_s25, %s1170_s26  }
   0x8   :  { %s53_s28 = sshll.u32 %s1269_s5, 4  ;;  %s1171_s29 = smov [#allocation6]   ;;  %s54_s28 = int_to_ptr.hbm [resolvable:$true] %s53_s28 }
   0x9   :  { %s55_s30 = sshll.u32 %s1171_s29, 4  ;;  %s56_s30 = int_to_ptr.vmem [resolvable:$true] %s55_s30 }
   0xa   :  { %61 = dma.hbm_to_vmem [thread:$0]  %s54_s28, 4096, %s56_s30, [#allocation5], %s1166_s21, %s1166_s21, %s1167_s22  }
   0xb   :  { %1161 = dma.done.wait [#allocation3], 512  }
   0xc   :  { %1162 = vsyncadd [#allocation3], 4294966784 }
   0xd   :  { %1163 = dma.done.wait [#allocation5], 8192  }
   0xe   :  { %1164 = vsyncadd [#allocation5], 4294959104  ;;  %vm118_vm0 = vcmask 130048   ;;  %v739_v0 = vld [vmem:[#allocation2] sm:$0xf]  ;;  %vm729_vm2 = vcmask 15360  }
   0xf   :  { %v1015_v1 = vld [vmem:[#allocation2 + $0xc] sm:$0xf0]  ;;  %v1013_v2 = vld [vmem:[#allocation2 + $0x4] sm:$0xf]  ;;  %v741_v4 = vld [vmem:[#allocation2 + $0x10] sm:$0xf0] }
  0x10   :  { %v740_v3 = vor.u32 %v1015_v1, %v739_v0  ;;  %v747_v5 = vld [vmem:[#allocation2 + $0x8] sm:$0xf]  ;;  %v1016_v6 = vld [vmem:[#allocation2 + $0x14] sm:$0xf0]  ;;  %v744_v7 = vor.u32 %v1013_v2, %v741_v4  ;;  %v1014_v9 = vld [vmem:[#allocation2 + $0xc] sm:$0xf] }
  0x11   :  { %v748_v8 = vor.u32 %v1016_v6, %v747_v5  ;;  %v749_v10 = vld [vmem:[#allocation2 + $0x18] sm:$0xf0]  ;;  %v83_v11 = vld [vmem:[%s1264_s0] sm:$0xf]  ;;  %v815_v13 = vld [vmem:[#allocation4 + $0x70] sm:$0xf] }
  0x12   :  { %129 = vmatpush.bf16.msra.mxu0 %v740_v3  ;;  %v752_v12 = vor.u32 %v1014_v9, %v749_v10  ;;  %v1032_v14 = vld [vmem:[#allocation4 + $0x74] sm:$0xf0]  ;;  %v879_v15 = vld [vmem:[#allocation4 + $0xf0] sm:$0xf]  ;;  %142 = vmatpush.bf16.msra.mxu1 %v744_v7  ;;  %v1031_v18 = vld [vmem:[#allocation4 + $0x74] sm:$0xf] }
  0x13   :  { %155 = vmatpush.bf16.msra.mxu2 %v748_v8  ;;  %v816_v16 = vor.u32 %v1032_v14, %v815_v13  ;;  %v1048_v17 = vld [vmem:[#allocation4 + $0xf4] sm:$0xf0]  ;;  %v817_v19 = vld [vmem:[#allocation4 + $0x78] sm:$0xf0]  ;;  %v1047_v22 = vld [vmem:[#allocation4 + $0xf4] sm:$0xf] }
  0x14   :  { %168 = vmatpush.bf16.msra.mxu3 %v752_v12  ;;  %v880_v20 = vor.u32 %v1048_v17, %v879_v15  ;;  %v820_v21 = vor.u32 %v1031_v18, %v817_v19  ;;  %v881_v23 = vld [vmem:[#allocation4 + $0xf8] sm:$0xf0]  ;;  %v807_v24 = vld [vmem:[#allocation4 + $0x60] sm:$0xf]  ;;  %v1030_v26 = vld [vmem:[#allocation4 + $0x64] sm:$0xf0] }
  0x15   :  { %753 = vmatmul.msk.bf16.vlgmr.msra.gmra.mxu0 %vm118_vm0, %v83_v11  ;;  %v884_v25 = vor.u32 %v1047_v22, %v881_v23  ;;  %v871_v27 = vld [vmem:[#allocation4 + $0xe0] sm:$0xf]  ;;  %v1046_v28 = vld [vmem:[#allocation4 + $0xe4] sm:$0xf0]  ;;  %754 = vmatmul.msk.bf16.vlgmr.msra.gmra.mxu1 %vm118_vm0, %v83_v11  ;;  %v1029_v29 = vld [vmem:[#allocation4 + $0x64] sm:$0xf]  ;;  %v808_v32 = vor.u32 %v1030_v26, %v807_v24 }
  0x16   :  { %755 = vmatmul.msk.bf16.vlgmr.msra.gmra.mxu2 %vm118_vm0, %v83_v11  ;;  %v809_v30 = vld [vmem:[#allocation4 + $0x68] sm:$0xf0]  ;;  %v1045_v31 = vld [vmem:[#allocation4 + $0xe4] sm:$0xf]  ;;  %385 = vmatpush.bf16.msrb.mxu0 %v816_v16  ;;  %v872_v34 = vor.u32 %v1046_v28, %v871_v27  ;;  %v799_v36 = vld [vmem:[#allocation4 + $0x50] sm:$0xf] }
  0x17   :  { %756 = vmatmul.msk.bf16.vlgmr.msra.gmra.mxu3 %vm118_vm0, %v83_v11  ;;  %v873_v33 = vld [vmem:[#allocation4 + $0xe8] sm:$0xf0]  ;;  %398 = vmatpush.bf16.msrb.mxu1 %v880_v20  ;;  %v812_v35 = vor.u32 %v1029_v29, %v809_v30  ;;  %v1028_v37 = vld [vmem:[#allocation4 + $0x54] sm:$0xf0]  ;;  %v863_v38 = vld [vmem:[#allocation4 + $0xd0] sm:$0xf] }
  0x18   :  { %411 = vmatpush.bf16.msrb.mxu2 %v820_v21  ;;  %424 = vmatpush.bf16.msrb.mxu3 %v884_v25  ;;  %v876_v39 = vor.u32 %v1045_v31, %v873_v33  ;;  %v1044_v40 = vld [vmem:[#allocation4 + $0xd4] sm:$0xf0]  ;;  %v1027_v41 = vld [vmem:[#allocation4 + $0x54] sm:$0xf]  ;;  %v801_v42 = vld [vmem:[#allocation4 + $0x58] sm:$0xf0]  ;;  %v800_v45 = vor.u32 %v1028_v37, %v799_v36 }
  0x19   :  { %v1043_v43 = vld [vmem:[#allocation4 + $0xd4] sm:$0xf]  ;;  %v865_v44 = vld [vmem:[#allocation4 + $0xd8] sm:$0xf0]  ;;  %v864_v46 = vor.u32 %v1044_v40, %v863_v38  ;;  %v804_v47 = vor.u32 %v1027_v41, %v801_v42  ;;  %v791_v48 = vld [vmem:[#allocation4 + $0x40] sm:$0xf] }
  0x1a   :  { %386 = vmatpush.bf16.msrb.mxu0 %v808_v32  ;;  %v1026_v49 = vld [vmem:[#allocation4 + $0x44] sm:$0xf0]  ;;  %v855_v50 = vld [vmem:[#allocation4 + $0xc0] sm:$0xf]  ;;  %v868_v51 = vor.u32 %v1043_v43, %v865_v44  ;;  %v1025_v53 = vld [vmem:[#allocation4 + $0x44] sm:$0xf] }
  0x1b   :  { %399 = vmatpush.bf16.msrb.mxu1 %v872_v34  ;;  %v1042_v52 = vld [vmem:[#allocation4 + $0xc4] sm:$0xf0]  ;;  %v793_v54 = vld [vmem:[#allocation4 + $0x48] sm:$0xf0]  ;;  %v1041_v55 = vld [vmem:[#allocation4 + $0xc4] sm:$0xf]  ;;  %v792_v57 = vor.u32 %v1026_v49, %v791_v48 }
  0x1c   :  { %412 = vmatpush.bf16.msrb.mxu2 %v812_v35  ;;  %425 = vmatpush.bf16.msrb.mxu3 %v876_v39  ;;  %v857_v56 = vld [vmem:[#allocation4 + $0xc8] sm:$0xf0]  ;;  %v856_v58 = vor.u32 %v1042_v52, %v855_v50  ;;  %v796_v59 = vor.u32 %v1025_v53, %v793_v54  ;;  %v783_v60 = vld [vmem:[#allocation4 + $0x30] sm:$0xf]  ;;  %v1024_v61 = vld [vmem:[#allocation4 + $0x34] sm:$0xf0] }
  0x1d   :  { %v847_v62 = vld [vmem:[#allocation4 + $0xb0] sm:$0xf]  ;;  %v860_v63 = vor.u32 %v1041_v55, %v857_v56  ;;  %v1040_v0 = vld [vmem:[#allocation4 + $0xb4] sm:$0xf0]  ;;  %v1023_v1 = vld [vmem:[#allocation4 + $0x34] sm:$0xf]  ;;  %v784_v5 = vor.u32 %v1024_v61, %v783_v60 }
  0x1e   :  { %387 = vmatpush.bf16.msrb.mxu0 %v800_v45  ;;  %v785_v2 = vld [vmem:[#allocation4 + $0x38] sm:$0xf0]  ;;  %v1039_v3 = vld [vmem:[#allocation4 + $0xb4] sm:$0xf]  ;;  %v848_v6 = vor.u32 %v1040_v0, %v847_v62  ;;  %v775_v8 = vld [vmem:[#allocation4 + $0x20] sm:$0xf] }
  0x1f   :  { %400 = vmatpush.bf16.msrb.mxu1 %v864_v46  ;;  %v849_v4 = vld [vmem:[#allocation4 + $0xb8] sm:$0xf0]  ;;  %v788_v7 = vor.u32 %v1023_v1, %v785_v2  ;;  %v1022_v9 = vld [vmem:[#allocation4 + $0x24] sm:$0xf0]  ;;  %v839_v10 = vld [vmem:[#allocation4 + $0xa0] sm:$0xf] }
  0x20   :  { %413 = vmatpush.bf16.msrb.mxu2 %v804_v47  ;;  %426 = vmatpush.bf16.msrb.mxu3 %v868_v51  ;;  %v852_v11 = vor.u32 %v1039_v3, %v849_v4  ;;  %v1038_v12 = vld [vmem:[#allocation4 + $0xa4] sm:$0xf0]  ;;  %v1021_v13 = vld [vmem:[#allocation4 + $0x24] sm:$0xf]  ;;  %v777_v14 = vld [vmem:[#allocation4 + $0x28] sm:$0xf0]  ;;  %v776_v17 = vor.u32 %v1022_v9, %v775_v8 }
  0x21   :  { %v1037_v15 = vld [vmem:[#allocation4 + $0xa4] sm:$0xf]  ;;  %v841_v16 = vld [vmem:[#allocation4 + $0xa8] sm:$0xf0]  ;;  %v840_v18 = vor.u32 %v1038_v12, %v839_v10  ;;  %v780_v19 = vor.u32 %v1021_v13, %v777_v14  ;;  %v767_v20 = vld [vmem:[#allocation4 + $0x10] sm:$0xf] }
  0x22   :  { %388 = vmatpush.bf16.msrb.mxu0 %v792_v57  ;;  %v1020_v21 = vld [vmem:[#allocation4 + $0x14] sm:$0xf0]  ;;  %v831_v22 = vld [vmem:[#allocation4 + $0x90] sm:$0xf]  ;;  %v844_v23 = vor.u32 %v1037_v15, %v841_v16  ;;  %v1019_v25 = vld [vmem:[#allocation4 + $0x14] sm:$0xf] }
  0x23   :  { %401 = vmatpush.bf16.msrb.mxu1 %v856_v58  ;;  %v1036_v24 = vld [vmem:[#allocation4 + $0x94] sm:$0xf0]  ;;  %v769_v26 = vld [vmem:[#allocation4 + $0x18] sm:$0xf0]  ;;  %v1035_v27 = vld [vmem:[#allocation4 + $0x94] sm:$0xf]  ;;  %v768_v29 = vor.u32 %v1020_v21, %v767_v20 }
  0x24   :  { %414 = vmatpush.bf16.msrb.mxu2 %v796_v59  ;;  %427 = vmatpush.bf16.msrb.mxu3 %v860_v63  ;;  %v833_v28 = vld [vmem:[#allocation4 + $0x98] sm:$0xf0]  ;;  %v759_v30 = vld [vmem:[#allocation4] sm:$0xf]  ;;  %v1018_v31 = vld [vmem:[#allocation4 + $0x4] sm:$0xf0]  ;;  %v832_v32 = vor.u32 %v1036_v24, %v831_v22  ;;  %v772_v33 = vor.u32 %v1019_v25, %v769_v26 }
  0x25   :  { %v823_v34 = vld [vmem:[#allocation4 + $0x80] sm:$0xf]  ;;  %v1034_v35 = vld [vmem:[#allocation4 + $0x84] sm:$0xf0]  ;;  %v1017_v36 = vld [vmem:[#allocation4 + $0x4] sm:$0xf]  ;;  %v836_v37 = vor.u32 %v1035_v27, %v833_v28  ;;  %v760_v44 = vor.u32 %v1018_v31, %v759_v30 }
  0x26   :  { %389 = vmatpush.bf16.msrb.mxu0 %v784_v5  ;;  %v761_v38 = vld [vmem:[#allocation4 + $0x8] sm:$0xf0]  ;;  %v1033_v39 = vld [vmem:[#allocation4 + $0x84] sm:$0xf]  ;;  %v943_v41 = vld [vmem:[#allocation6 + $0x70] sm:$0xf]  ;;  %v824_v48 = vor.u32 %v1034_v35, %v823_v34 }
  0x27   :  { %402 = vmatpush.bf16.msrb.mxu1 %v848_v6  ;;  %v825_v40 = vld [vmem:[#allocation4 + $0x88] sm:$0xf0]  ;;  %v1064_v42 = vld [vmem:[#allocation6 + $0x74] sm:$0xf0]  ;;  %v1007_v43 = vld [vmem:[#allocation6 + $0xf0] sm:$0xf]  ;;  %v764_v49 = vor.u32 %v1017_v36, %v761_v38 }
  0x28   :  { %415 = vmatpush.bf16.msrb.mxu2 %v788_v7  ;;  %428 = vmatpush.bf16.msrb.mxu3 %v852_v11  ;;  %v1080_v45 = vld [vmem:[#allocation6 + $0xf4] sm:$0xf0]  ;;  %v1063_v46 = vld [vmem:[#allocation6 + $0x74] sm:$0xf]  ;;  %v945_v47 = vld [vmem:[#allocation6 + $0x78] sm:$0xf0]  ;;  %v828_v52 = vor.u32 %v1033_v39, %v825_v40  ;;  %v944_v53 = vor.u32 %v1064_v42, %v943_v41 }
  0x29   :  { %v1079_v50 = vld [vmem:[#allocation6 + $0xf4] sm:$0xf]  ;;  %v1009_v51 = vld [vmem:[#allocation6 + $0xf8] sm:$0xf0]  ;;  %v1008_v54 = vor.u32 %v1080_v45, %v1007_v43  ;;  %v948_v55 = vor.u32 %v1063_v46, %v945_v47  ;;  %v935_v57 = vld [vmem:[#allocation6 + $0x60] sm:$0xf] }
  0x2a   :  { %390 = vmatpush.bf16.msrb.mxu0 %v776_v17  ;;  %v1012_v56 = vor.u32 %v1079_v50, %v1009_v51  ;;  %v1062_v58 = vld [vmem:[#allocation6 + $0x64] sm:$0xf0]  ;;  %v999_v59 = vld [vmem:[#allocation6 + $0xe0] sm:$0xf]  ;;  %v1061_v62 = vld [vmem:[#allocation6 + $0x64] sm:$0xf] }
  0x2b   :  { %403 = vmatpush.bf16.msrb.mxu1 %v840_v18  ;;  %v936_v60 = vor.u32 %v1062_v58, %v935_v57  ;;  %v1078_v61 = vld [vmem:[#allocation6 + $0xe4] sm:$0xf0]  ;;  %v937_v63 = vld [vmem:[#allocation6 + $0x68] sm:$0xf0]  ;;  %v1077_v2 = vld [vmem:[#allocation6 + $0xe4] sm:$0xf] }
  0x2c   :  { %416 = vmatpush.bf16.msrb.mxu2 %v780_v19  ;;  %429 = vmatpush.bf16.msrb.mxu3 %v844_v23  ;;  %v1000_v0 = vor.u32 %v1078_v61, %v999_v59  ;;  %v940_v1 = vor.u32 %v1061_v62, %v937_v63  ;;  %v1001_v3 = vld [vmem:[#allocation6 + $0xe8] sm:$0xf0]  ;;  %v927_v5 = vld [vmem:[#allocation6 + $0x50] sm:$0xf]  ;;  %v1060_v6 = vld [vmem:[#allocation6 + $0x54] sm:$0xf0] }
  0x2d   :  { %v1004_v4 = vor.u32 %v1077_v2, %v1001_v3  ;;  %v991_v7 = vld [vmem:[#allocation6 + $0xd0] sm:$0xf]  ;;  %v928_v8 = vor.u32 %v1060_v6, %v927_v5  ;;  %v1076_v9 = vld [vmem:[#allocation6 + $0xd4] sm:$0xf0]  ;;  %v1059_v10 = vld [vmem:[#allocation6 + $0x54] sm:$0xf] }
  0x2e   :  { %391 = vmatpush.bf16.msrb.mxu0 %v768_v29  ;;  %v929_v11 = vld [vmem:[#allocation6 + $0x58] sm:$0xf0]  ;;  %v992_v12 = vor.u32 %v1076_v9, %v991_v7  ;;  %v1075_v14 = vld [vmem:[#allocation6 + $0xd4] sm:$0xf]  ;;  %v919_v17 = vld [vmem:[#allocation6 + $0x40] sm:$0xf] }
  0x2f   :  { %404 = vmatpush.bf16.msrb.mxu1 %v832_v32  ;;  %v932_v13 = vor.u32 %v1059_v10, %v929_v11  ;;  %v993_v15 = vld [vmem:[#allocation6 + $0xd8] sm:$0xf0]  ;;  %v1058_v18 = vld [vmem:[#allocation6 + $0x44] sm:$0xf0]  ;;  %v983_v19 = vld [vmem:[#allocation6 + $0xc0] sm:$0xf] }
  0x30   :  { %417 = vmatpush.bf16.msrb.mxu2 %v772_v33  ;;  %430 = vmatpush.bf16.msrb.mxu3 %v836_v37  ;;  %v996_v16 = vor.u32 %v1075_v14, %v993_v15  ;;  %v920_v20 = vor.u32 %v1058_v18, %v919_v17  ;;  %v1074_v21 = vld [vmem:[#allocation6 + $0xc4] sm:$0xf0]  ;;  %v1057_v22 = vld [vmem:[#allocation6 + $0x44] sm:$0xf]  ;;  %v921_v23 = vld [vmem:[#allocation6 + $0x48] sm:$0xf0] }
  0x31   :  { %v984_v24 = vor.u32 %v1074_v21, %v983_v19  ;;  %v924_v25 = vor.u32 %v1057_v22, %v921_v23  ;;  %v1073_v26 = vld [vmem:[#allocation6 + $0xc4] sm:$0xf]  ;;  %v985_v27 = vld [vmem:[#allocation6 + $0xc8] sm:$0xf0]  ;;  %v911_v29 = vld [vmem:[#allocation6 + $0x30] sm:$0xf] }
  0x32   :  { %392 = vmatpush.bf16.msrb.mxu0 %v760_v44  ;;  %v988_v28 = vor.u32 %v1073_v26, %v985_v27  ;;  %v1056_v30 = vld [vmem:[#allocation6 + $0x34] sm:$0xf0]  ;;  %v975_v31 = vld [vmem:[#allocation6 + $0xb0] sm:$0xf]  ;;  %v1055_v34 = vld [vmem:[#allocation6 + $0x34] sm:$0xf] }
  0x33   :  { %405 = vmatpush.bf16.msrb.mxu1 %v824_v48  ;;  %v912_v32 = vor.u32 %v1056_v30, %v911_v29  ;;  %v1072_v33 = vld [vmem:[#allocation6 + $0xb4] sm:$0xf0]  ;;  %v913_v35 = vld [vmem:[#allocation6 + $0x38] sm:$0xf0]  ;;  %v1071_v38 = vld [vmem:[#allocation6 + $0xb4] sm:$0xf] }
  0x34   :  { %418 = vmatpush.bf16.msrb.mxu2 %v764_v49  ;;  %431 = vmatpush.bf16.msrb.mxu3 %v828_v52  ;;  %v976_v36 = vor.u32 %v1072_v33, %v975_v31  ;;  %v916_v37 = vor.u32 %v1055_v34, %v913_v35  ;;  %v977_v39 = vld [vmem:[#allocation6 + $0xb8] sm:$0xf0]  ;;  %v903_v41 = vld [vmem:[#allocation6 + $0x20] sm:$0xf]  ;;  %v1054_v42 = vld [vmem:[#allocation6 + $0x24] sm:$0xf0] }
  0x35   :  { %v980_v40 = vor.u32 %v1071_v38, %v977_v39  ;;  %v967_v43 = vld [vmem:[#allocation6 + $0xa0] sm:$0xf]  ;;  %v904_v44 = vor.u32 %v1054_v42, %v903_v41  ;;  %v1070_v45 = vld [vmem:[#allocation6 + $0xa4] sm:$0xf0]  ;;  %v1053_v46 = vld [vmem:[#allocation6 + $0x24] sm:$0xf] }
  0x36   :  { %644 = vmatpush.bf16.msra.mxu0 %v944_v53  ;;  %v905_v47 = vld [vmem:[#allocation6 + $0x28] sm:$0xf0]  ;;  %v968_v48 = vor.u32 %v1070_v45, %v967_v43  ;;  %v1069_v50 = vld [vmem:[#allocation6 + $0xa4] sm:$0xf]  ;;  %v895_v52 = vld [vmem:[#allocation6 + $0x10] sm:$0xf] }
  0x37   :  { %657 = vmatpush.bf16.msra.mxu1 %v1008_v54  ;;  %v908_v49 = vor.u32 %v1053_v46, %v905_v47  ;;  %v969_v51 = vld [vmem:[#allocation6 + $0xa8] sm:$0xf0]  ;;  %v1052_v54 = vld [vmem:[#allocation6 + $0x14] sm:$0xf0]  ;;  %v1051_v59 = vld [vmem:[#allocation6 + $0x14] sm:$0xf] }
  0x38   :  { %670 = vmatpush.bf16.msra.mxu2 %v948_v55  ;;  %683 = vmatpush.bf16.msra.mxu3 %v1012_v56  ;;  %v972_v53 = vor.u32 %v1069_v50, %v969_v51  ;;  %v959_v55 = vld [vmem:[#allocation6 + $0x90] sm:$0xf]  ;;  %v1068_v56 = vld [vmem:[#allocation6 + $0x94] sm:$0xf0]  ;;  %v896_v57 = vor.u32 %v1052_v54, %v895_v52  ;;  %v1067_v61 = vld [vmem:[#allocation6 + $0x94] sm:$0xf] }
  0x39   :  { %v960_v58 = vor.u32 %v1068_v56, %v959_v55  ;;  %v961_v63 = vld [vmem:[#allocation6 + $0x98] sm:$0xf0]  ;;  %v951_v3 = vld [vmem:[#allocation6 + $0x80] sm:$0xf]  ;;  %v1049_v5 = vld [vmem:[#allocation6 + $0x4] sm:$0xf] }
  0x3a   :  { %645 = vmatpush.bf16.msra.mxu0 %v936_v60  ;;  %v897_v60 = vld [vmem:[#allocation6 + $0x18] sm:$0xf0]  ;;  %v964_v2 = vor.u32 %v1067_v61, %v961_v63  ;;  %v889_v7 = vld [vmem:[#allocation6 + $0x8] sm:$0xf0]  ;;  %v471_v61 = vld [vmem:[%s1270_s6] sm:$0x3] }
  0x3b   :  { %658 = vmatpush.bf16.msra.mxu1 %v1000_v0  ;;  %v900_v62 = vor.u32 %v1051_v59, %v897_v60  ;;  %v887_v0 = vld [vmem:[#allocation6] sm:$0xf]  ;;  %v953_v9 = vld [vmem:[#allocation6 + $0x88] sm:$0xf0]  ;;  %v892_v11 = vor.u32 %v1049_v5, %v889_v7  ;;  %v473_v63 = vperm.slane %v471_v61, 0 }
  0x3c   :  { %671 = vmatpush.bf16.msra.mxu2 %v940_v1  ;;  %684 = vmatpush.bf16.msra.mxu3 %v1004_v4  ;;  %v1050_v1 = vld [vmem:[#allocation6 + $0x4] sm:$0xf0] }
  0x3d   :  { %v1066_v4 = vld [vmem:[#allocation6 + $0x84] sm:$0xf0]  ;;  %v888_v6 = vor.u32 %v1050_v1, %v887_v0 }
  0x3e   :  { %646 = vmatpush.bf16.msra.mxu0 %v928_v8  ;;  %v1065_v8 = vld [vmem:[#allocation6 + $0x84] sm:$0xf]  ;;  %v952_v10 = vor.u32 %v1066_v4, %v951_v3 }
  0x3f   :  { %659 = vmatpush.bf16.msra.mxu1 %v992_v12  ;;  %v956_v12 = vor.u32 %v1065_v8, %v953_v9  ;;  %v474_v8 = vperm.slane %v471_v61, 1 }
  0x40   :  { %672 = vmatpush.bf16.msra.mxu2 %v932_v13  ;;  %685 = vmatpush.bf16.msra.mxu3 %v996_v16  ;;  %v88_v13 = vld [vmem:[%s1266_s2] sm:$0xf] }
  0x41   :  { %v90_v14 = vperm.slane %v88_v13, 0  ;;  %v91_v15 = vperm.slane %v88_v13, 1  ;;  %v92_v22 = vperm.slane %v88_v13, 2  ;;  %v93_v23 = vperm.slane %v88_v13, 3 }
  0x42   :  { %647 = vmatpush.bf16.msra.mxu0 %v920_v20 }
  0x43   :  { %660 = vmatpush.bf16.msra.mxu1 %v984_v24 }
  0x44   :  { %673 = vmatpush.bf16.msra.mxu2 %v924_v25  ;;  %686 = vmatpush.bf16.msra.mxu3 %v988_v28 }
  0x46   :  { %648 = vmatpush.bf16.msra.mxu0 %v912_v32 }
  0x47   :  { %661 = vmatpush.bf16.msra.mxu1 %v976_v36 }
  0x48   :  { %674 = vmatpush.bf16.msra.mxu2 %v916_v37  ;;  %687 = vmatpush.bf16.msra.mxu3 %v980_v40 }
  0x4a   :  { %649 = vmatpush.bf16.msra.mxu0 %v904_v44  ;;  %v212_v44 = vld [vmem:[%s1268_s4] sm:$0x3] }
  0x4b   :  { %662 = vmatpush.bf16.msra.mxu1 %v968_v48  ;;  %v214_v45 = vperm.slane %v212_v44, 0 }
  0x4c   :  { %675 = vmatpush.bf16.msra.mxu2 %v908_v49  ;;  %688 = vmatpush.bf16.msra.mxu3 %v972_v53  ;;  %v215_v49 = vperm.slane %v212_v44, 1  ;;  %v698_v53 = vld [vmem:[%s1271_s7] sm:$0x3] }
  0x4d   :  { %v700_v59 = vperm.slane %v698_v53, 0  ;;  %v701_v60 = vperm.slane %v698_v53, 1 }
  0x4e   :  { %650 = vmatpush.bf16.msra.mxu0 %v896_v57 }
  0x4f   :  { %663 = vmatpush.bf16.msra.mxu1 %v960_v58 }
  0x50   :  { %676 = vmatpush.bf16.msra.mxu2 %v900_v62  ;;  %689 = vmatpush.bf16.msra.mxu3 %v964_v2 }
  0x52   :  { %651 = vmatpush.bf16.msra.mxu0 %v888_v6 }
  0x53   :  { %664 = vmatpush.bf16.msra.mxu1 %v952_v10  ;;  %v709_v10 = vld [vmem:[%s1272_s8] sm:$0x3] }
  0x54   :  { %677 = vmatpush.bf16.msra.mxu2 %v892_v11  ;;  %690 = vmatpush.bf16.msra.mxu3 %v956_v12 }
  0x92   :  { %v131_v16 = vpop.f32.mrf.mxu0  ;;  %v144_v18 = vpop.f32.mrf.mxu1 }
  0x93   :  { %v132_v17 = vadd.f32 %v131_v16, %v90_v14  ;;  %v145_v19 = vadd.f32 %v144_v18, %v91_v15 }
  0x95   :  { %v174_v20 = vmax.f32 %v132_v17, 0.0  ;;  %v175_v21 = vmax.f32 %v145_v19, 0.0  ;;  %v711_v17 = vperm.slane %v709_v10, 0  ;;  %v712_v19 = vperm.slane %v709_v10, 1 }
  0x97   :  { %v178_v24 = vpack.c.bf16 %v175_v21, %v174_v20 }
  0x99   :  { %v157_v25 = vpop.f32.mrf.mxu2  ;;  %v219_v29 = vunpack.c.l.b16 %v178_v24  ;;  %v220_v30 = vunpack.c.h.b16 %v178_v24 }
  0x9a   :  { %v133_v26 = vpop.f32.mrf.mxu0  ;;  %v158_v27 = vadd.f32 %v157_v25, %v92_v22  ;;  %v170_v28 = vpop.f32.mrf.mxu3 }
  0x9b   :  { %v146_v31 = vpop.f32.mrf.mxu1  ;;  %v171_v32 = vadd.f32 %v170_v28, %v93_v23  ;;  %v221_v33 = vpack.c.b16 %v219_v29, %v219_v29  ;;  %v222_v34 = vpack.c.b16 %v220_v30, %v220_v30  ;;  %v720_v26 = vlaneseq  ;;  %v1088_v29 = vld [vmem:[%s1273_s9] ss:$0 sm:$0xff] }
  0x9c   :  { %v176_v35 = vmax.f32 %v158_v27, 0.0 }
  0x9d   :  { %v177_v36 = vmax.f32 %v171_v32, 0.0  ;;  %393 = vmatmul.bf16.vlgmr.msrb.gmra.mxu0 %v221_v33  ;;  %406 = vmatmul.bf16.vlgmr.msrb.gmra.mxu1 %v222_v34  ;;  %v721_v28 = vand.u32 127, %v720_v26 }
  0x9e   :  { %419 = vmatmul.bf16.vlgmr.msrb.gmra.mxu2 %v221_v33  ;;  %432 = vmatmul.bf16.vlgmr.msrb.gmra.mxu3 %v222_v34 }
  0x9f   :  { %v179_v38 = vpack.c.bf16 %v177_v36, %v176_v35  ;;  %vm722_vm1 = vcmp.eq.s32.totalorder %v721_v28, 0 }
  0xa1   :  { %v159_v37 = vpop.f32.mrf.mxu2  ;;  %v478_v40 = vunpack.c.l.b16 %v179_v38  ;;  %v479_v41 = vunpack.c.h.b16 %v179_v38 }
  0xa2   :  { %v172_v39 = vpop.f32.mrf.mxu3 }
  0xa3   :  { %v480_v42 = vpack.c.b16 %v478_v40, %v478_v40  ;;  %v481_v43 = vpack.c.b16 %v479_v41, %v479_v41 }
  0xad   :  { %652 = vmatmul.bf16.vlgmr.msra.gmra.mxu0 %v480_v42  ;;  %665 = vmatmul.bf16.vlgmr.msra.gmra.mxu1 %v481_v43 }
  0xae   :  { %678 = vmatmul.bf16.vlgmr.msra.gmra.mxu2 %v480_v42  ;;  %691 = vmatmul.bf16.vlgmr.msra.gmra.mxu3 %v481_v43 }
 0x11a   :  { %v394_v46 = vpop.f32.mrf.mxu0  ;;  %v407_v47 = vpop.f32.mrf.mxu1 }
 0x11b   :  { %v395_v48 = vadd.f32 %v394_v46, %v214_v45 }
 0x11d   :  { %v408_v50 = vadd.f32 %v407_v47, %v395_v48 }
 0x11f   :  { %v437_v57 = vmax.f32 %v408_v50, 0.0 }
 0x121   :  { %v420_v51 = vpop.f32.mrf.mxu2  ;;  %v433_v52 = vpop.f32.mrf.mxu3  ;;  %v704_v0 = vmul.f32 %v700_v59, %v437_v57 }
 0x122   :  { %v421_v54 = vadd.f32 %v420_v51, %v215_v49  ;;  %v396_v55 = vpop.f32.mrf.mxu0  ;;  %v409_v56 = vpop.f32.mrf.mxu1 }
 0x124   :  { %v434_v58 = vadd.f32 %v433_v52, %v421_v54 }
 0x126   :  { %v438_v62 = vmax.f32 %v434_v58, 0.0 }
 0x128   :  { %v705_v1 = vmul.f32 %v701_v60, %v438_v62 }
 0x129   :  { %v422_v2 = vpop.f32.mrf.mxu2  ;;  %v435_v3 = vpop.f32.mrf.mxu3 }
 0x12a   :  { %v653_v4 = vpop.f32.mrf.mxu0  ;;  %v666_v5 = vpop.f32.mrf.mxu1  ;;  %v706_v6 = vadd.f32 %v705_v1, %v704_v0 }
 0x12b   :  { %v654_v7 = vadd.f32 %v653_v4, %v473_v63 }
 0x12c   :  { %707 = vadd.xlane.f32.xlu0 %v706_v6 }
 0x12d   :  { %v667_v9 = vadd.f32 %v666_v5, %v654_v7 }
 0x12f   :  { %v696_v16 = vmax.f32 %v667_v9, 0.0 }
 0x131   :  { %v679_v11 = vpop.f32.mrf.mxu2  ;;  %v692_v12 = vpop.f32.mrf.mxu3  ;;  %v715_v21 = vmul.f32 %v711_v17, %v696_v16 }
 0x132   :  { %v680_v13 = vadd.f32 %v679_v11, %v474_v8  ;;  %v655_v14 = vpop.f32.mrf.mxu0  ;;  %v668_v15 = vpop.f32.mrf.mxu1 }
 0x134   :  { %v693_v18 = vadd.f32 %v692_v12, %v680_v13 }
 0x136   :  { %v697_v20 = vmax.f32 %v693_v18, 0.0 }
 0x138   :  { %v716_v22 = vmul.f32 %v712_v19, %v697_v20 }
 0x139   :  { %v681_v23 = vpop.f32.mrf.mxu2  ;;  %v694_v24 = vpop.f32.mrf.mxu3 }
 0x13a   :  { %v717_v25 = vadd.f32 %v716_v22, %v715_v21 }
 0x13c   :  { %718 = vadd.xlane.f32.xlu0 %v717_v25 }
 0x19f   :  { %v708_v27 = vpop.xlane.xlu0 %707 }
 0x1af   :  { %v719_v30 = vpop.xlane.xlu0 %718 }
 0x1b0   :  { %v723_v31 = vsel %vm722_vm1, %v708_v27, %v719_v30 }
 0x1b1   :  { %v728_v32 = vadd.f32 %v1088_v29, %v723_v31 }
 0x1b3   :  { %730 = vst.msk [vmem:[%s1274_s10] sm:$0xff] %vm729_vm2, %v728_v32 }
 0x1b4   :  { %735 = vsyncpa [#allocation3], 1 }
 0x1b5   :  { %736 = vsyncpa [#allocation5], 1 }

</bundles_post_ra>
